<compile_context>
chip_gen: v5e
topology: v5e:2x2
jax: 0.10.0
libtpu: 0.0.40
codegen_flags: <defaults>
</compile_context>

<pallas_src>
import functools

import jax
import jax.numpy as jnp
from jax.experimental import pallas as pl
from jax.experimental.pallas import tpu as pltpu

_MIB = 1 << 20


# --------------------------------------------------------------------------
# Kernels
# --------------------------------------------------------------------------

def _rowtile_matmul_kernel(a_ref, b_ref, o_ref):
    """out[i_tile] = a[i_tile] @ b   (full-K block; b resident via constant map)."""
    o_ref[...] = jnp.dot(a_ref[...], b_ref[...],
                         preferred_element_type=jnp.float32).astype(o_ref.dtype)


def _gcn_agg_relu_kernel(adj_ref, v_ref, b_ref, o_ref, acc_ref,
                         *, tile_k, v_resident):
    """out[i_tile] = relu( sum_k adj[i_tile, k_tile] @ v[k_tile] + b )."""
    k = pl.program_id(1)

    @pl.when(k == 0)
    def _init():
        acc_ref[...] = jnp.zeros_like(acc_ref)

    if v_resident:
        off = pl.multiple_of(k * tile_k, 128)
        v = v_ref[pl.ds(off, tile_k), :]          # slice the resident copy
    else:
        v = v_ref[...]                            # streamed per-k tile
    acc_ref[...] += jnp.dot(adj_ref[...], v, preferred_element_type=jnp.float32)

    @pl.when(k == pl.num_programs(1) - 1)
    def _finalize():
        o_ref[...] = jnp.maximum(acc_ref[...] + b_ref[...], 0.0).astype(o_ref.dtype)


def _gcn_agg_head_kernel(adj_ref, v_ref, b_ref, logp_ref, zn_ref, acc_ref,
                         *, tile_k, v_resident, num_classes):
    """z[i_tile] = sum_k adj[i,k] @ v[k] + b ; emit log_softmax(z) and
    zn = z * rsqrt(sum z^2) (inverse row norm folded in, replacing the
    [N,1]@[1,N] outer product of the reference)."""
    k = pl.program_id(1)

    @pl.when(k == 0)
    def _init():
        acc_ref[...] = jnp.zeros_like(acc_ref)

    if v_resident:
        off = pl.multiple_of(k * tile_k, 128)
        v = v_ref[pl.ds(off, tile_k), :]
    else:
        v = v_ref[...]
    acc_ref[...] += jnp.dot(adj_ref[...], v, preferred_element_type=jnp.float32)

    @pl.when(k == pl.num_programs(1) - 1)
    def _finalize():
        z = acc_ref[...] + b_ref[...]                       # [TM, C_pad] f32
        c_pad = z.shape[1]
        lane = jax.lax.broadcasted_iota(jnp.int32, (1, c_pad), 1)
        valid = lane < num_classes                          # padded-lane mask
        zm = jnp.where(valid, z, jnp.float32(-1e30))
        m = jnp.max(zm, axis=1, keepdims=True)
        e = jnp.exp(zm - m)                                 # padded lanes -> 0
        lse = jnp.log(jnp.sum(e, axis=1, keepdims=True)) + m
        logp_ref[...] = (z - lse).astype(logp_ref.dtype)

        # padded lanes of z are exactly 0 -> full-lane sum is exact; the eps
        # guards all-zero (padded) rows against rsqrt(0)=inf.
        sq = jnp.sum(z * z, axis=1, keepdims=True)
        inv_norm = jax.lax.rsqrt(jnp.maximum(sq, jnp.float32(1e-30)))
        zn_ref[...] = (z * inv_norm).astype(zn_ref.dtype)


def _feature_dis_kernel(zni_ref, znj_ref, onem_ref, o_ref, *, tile, zn_resident):
    """x_dis[i,j] tile = (1 - mask)[i,j] * (zn_i · zn_j): cosine similarity via
    dot_general contracting last dims (no explicit transpose); (1-mask) arrives
    as int8."""
    if zn_resident:
        off = pl.multiple_of(pl.program_id(1) * tile, 128)
        znj = znj_ref[pl.ds(off, tile), :]
    else:
        znj = znj_ref[...]
    d = jax.lax.dot_general(
        zni_ref[...], znj,
        dimension_numbers=(((1,), (1,)), ((), ())),
        preferred_element_type=jnp.float32)
    o_ref[...] = onem_ref[...].astype(jnp.float32) * d


# --------------------------------------------------------------------------
# Helpers
# --------------------------------------------------------------------------

def _round_up(n, m):
    return ((n + m - 1) // m) * m


def _pad2(a, rows, cols, dtype):
    a = jnp.asarray(a, dtype)
    return jnp.pad(a, ((0, rows - a.shape[0]), (0, cols - a.shape[1])))


def _pick_tile(extent, desired):
    """Largest multiple of 128 <= desired that divides extent (extent % 128 == 0)."""
    t = max(128, (min(desired, extent) // 128) * 128)
    while extent % t != 0:
        t -= 128
    return t


def _vmem_budget_bytes():
    """~75% of physical VMEM; falls back to a v7x-safe 64 MiB assumption."""
    try:
        cap = int(pltpu.get_tpu_info().vmem_capacity_bytes)
    except Exception:
        cap = 64 * _MIB
    return max(32 * _MIB, (cap * 3) // 4)


def _vmem_limit(needed, budget):
    want = max(needed + 4 * _MIB, 32 * _MIB)
    return int(max(min(want, budget), needed + 2 * _MIB))


# --------------------------------------------------------------------------
# pallas_call wrappers
# --------------------------------------------------------------------------

def _row_tiled_matmul(a, b, tile_m, budget):
    m, k = a.shape
    n = b.shape[1]
    needed = 2 * (tile_m * k * 2) + 2 * (k * n * 2) + 2 * (tile_m * n * 2)
    return pl.pallas_call(
        _rowtile_matmul_kernel,
        out_shape=jax.ShapeDtypeStruct((m, n), jnp.bfloat16),
        grid=(m // tile_m,),
        in_specs=[pl.BlockSpec((tile_m, k), lambda i: (i, 0)),
                  pl.BlockSpec((k, n), lambda i: (0, 0))],
        out_specs=pl.BlockSpec((tile_m, n), lambda i: (i, 0)),
        compiler_params=pltpu.CompilerParams(
            dimension_semantics=("parallel",),
            vmem_limit_bytes=_vmem_limit(needed, budget)),
        cost_estimate=pl.CostEstimate(
            flops=2 * m * k * n, transcendentals=0,
            bytes_accessed=m * k * 2 + k * n * 2 + m * n * 2),
    )(a, b)


def _gcn_aggregate_relu(adj, v, b, tile_m, tile_k, budget):
    n = adj.shape[0]
    h = v.shape[1]
    resident_bytes = 2 * (n * h * 2)                  # whole v in VMEM (2 bufs)
    stream_bytes = 2 * (tile_k * h * 2)
    base = (2 * (tile_m * tile_k * 2)                 # adj tiles (double buf)
            + 2 * (tile_m * h * 2)                    # out tiles
            + tile_m * h * 4                          # f32 accumulator
            + h * 4)                                  # bias
    v_resident = (base + resident_bytes) <= budget
    needed = base + (resident_bytes if v_resident else stream_bytes)
    v_spec = (pl.BlockSpec((n, h), lambda i, k: (0, 0)) if v_resident
              else pl.BlockSpec((tile_k, h), lambda i, k: (k, 0)))
    kern = functools.partial(_gcn_agg_relu_kernel, tile_k=tile_k,
                             v_resident=v_resident)
    return pl.pallas_call(
        kern,
        out_shape=jax.ShapeDtypeStruct((n, h), jnp.bfloat16),
        grid=(n // tile_m, n // tile_k),
        in_specs=[pl.BlockSpec((tile_m, tile_k), lambda i, k: (i, k)),
                  v_spec,
                  pl.BlockSpec((1, h), lambda i, k: (0, 0))],
        out_specs=pl.BlockSpec((tile_m, h), lambda i, k: (i, 0)),
        scratch_shapes=[pltpu.VMEM((tile_m, h), jnp.float32)],
        compiler_params=pltpu.CompilerParams(
            dimension_semantics=("parallel", "arbitrary"),
            vmem_limit_bytes=_vmem_limit(needed, budget)),
        cost_estimate=pl.CostEstimate(
            flops=2 * n * n * h, transcendentals=0,
            bytes_accessed=n * n * 2 + n * h * 2 + n * h * 2),
    )(adj, v, b)


def _gcn_aggregate_head(adj, v, b, num_classes, tile_m, tile_k, budget):
    n = adj.shape[0]
    c_pad = v.shape[1]
    resident_bytes = 2 * (n * c_pad * 2)
    stream_bytes = 2 * (tile_k * c_pad * 2)
    base = (2 * (tile_m * tile_k * 2)                 # adj tiles
            + 2 * (tile_m * c_pad * 4)                # logp out (f32)
            + 2 * (tile_m * c_pad * 2)                # zn out (bf16)
            + tile_m * c_pad * 4                      # accumulator
            + c_pad * 4)                              # bias
    v_resident = (base + resident_bytes) <= budget
    needed = base + (resident_bytes if v_resident else stream_bytes)
    v_spec = (pl.BlockSpec((n, c_pad), lambda i, k: (0, 0)) if v_resident
              else pl.BlockSpec((tile_k, c_pad), lambda i, k: (k, 0)))
    kern = functools.partial(_gcn_agg_head_kernel, tile_k=tile_k,
                             v_resident=v_resident, num_classes=num_classes)
    return pl.pallas_call(
        kern,
        out_shape=(jax.ShapeDtypeStruct((n, c_pad), jnp.float32),
                   jax.ShapeDtypeStruct((n, c_pad), jnp.bfloat16)),
        grid=(n // tile_m, n // tile_k),
        in_specs=[pl.BlockSpec((tile_m, tile_k), lambda i, k: (i, k)),
                  v_spec,
                  pl.BlockSpec((1, c_pad), lambda i, k: (0, 0))],
        out_specs=(pl.BlockSpec((tile_m, c_pad), lambda i, k: (i, 0)),
                   pl.BlockSpec((tile_m, c_pad), lambda i, k: (i, 0))),
        scratch_shapes=[pltpu.VMEM((tile_m, c_pad), jnp.float32)],
        compiler_params=pltpu.CompilerParams(
            dimension_semantics=("parallel", "arbitrary"),
            vmem_limit_bytes=_vmem_limit(needed, budget)),
        cost_estimate=pl.CostEstimate(
            flops=2 * n * n * c_pad, transcendentals=2 * n * c_pad,
            bytes_accessed=n * n * 2 + n * c_pad * 2 + n * c_pad * 6),
    )(adj, v, b)


def _feature_dis(zn, onem_i8, tile, budget):
    n, c_pad = zn.shape
    resident_bytes = 2 * (n * c_pad * 2)              # zn_j resident (2 bufs)
    stream_bytes = 2 * (tile * c_pad * 2)
    base = (2 * (tile * c_pad * 2)                    # zn_i tiles
            + 2 * (tile * tile * 1)                   # (1-mask) int8 tiles
            + 2 * (tile * tile * 4))                  # f32 out tiles
    zn_resident = (base + resident_bytes) <= budget
    needed = base + (resident_bytes if zn_resident else stream_bytes)
    znj_spec = (pl.BlockSpec((n, c_pad), lambda i, j: (0, 0)) if zn_resident
                else pl.BlockSpec((tile, c_pad), lambda i, j: (j, 0)))
    kern = functools.partial(_feature_dis_kernel, tile=tile,
                             zn_resident=zn_resident)
    return pl.pallas_call(
        kern,
        out_shape=jax.ShapeDtypeStruct((n, n), jnp.float32),
        grid=(n // tile, n // tile),
        in_specs=[pl.BlockSpec((tile, c_pad), lambda i, j: (i, 0)),
                  znj_spec,
                  pl.BlockSpec((tile, tile), lambda i, j: (i, j))],
        out_specs=pl.BlockSpec((tile, tile), lambda i, j: (i, j)),
        compiler_params=pltpu.CompilerParams(
            dimension_semantics=("parallel", "parallel"),
            vmem_limit_bytes=_vmem_limit(needed, budget)),
        cost_estimate=pl.CostEstimate(
            flops=2 * n * n * c_pad, transcendentals=0,
            bytes_accessed=2 * n * c_pad * 2 + n * n * 1 + n * n * 4),
    )(zn, zn, onem_i8)


def gcn_loss_forward(x, adj, w1, b1, w2, b2, mask, *,
                     tile_n=256, tile_k=512, tile_dis=512,
                     vmem_budget_bytes=None):
    """Full GCN_LOSS forward.  mask is assumed binary (0/1), as in GraphMLP."""
    n, f = x.shape
    hid = w1.shape[1]
    c = w2.shape[1]

    budget = (_vmem_budget_bytes() if vmem_budget_bytes is None
              else int(vmem_budget_bytes))

    # Pad N only to a multiple of 256 (decoupled from tile_dis so large dis
    # tiles never inflate the N^2 arrays quadratically); tiles are then chosen
    # as the largest 128-multiples that divide n_pad.
    n_pad = _round_up(n, 256)
    f_pad = _round_up(f, 128)
    h_pad = _round_up(hid, 128)
    c_pad = _round_up(c, 128)

    tm = _pick_tile(n_pad, tile_n)
    tk = _pick_tile(n_pad, tile_k)
    td = _pick_tile(n_pad, tile_dis)

    bf16 = jnp.bfloat16
    xp = _pad2(x, n_pad, f_pad, bf16)
    adjp = _pad2(adj, n_pad, n_pad, bf16)
    w1p = _pad2(w1, f_pad, h_pad, bf16)
    w2p = _pad2(w2, h_pad, c_pad, bf16)
    b1p = _pad2(jnp.reshape(b1, (1, -1)), 1, h_pad, jnp.float32)
    b2p = _pad2(jnp.reshape(b2, (1, -1)), 1, c_pad, jnp.float32)
    # (1 - mask) precomputed and passed as int8: halves the N^2 mask read in
    # the memory-bound feature-dis stage (exact for a 0/1 mask). Padded
    # entries are 0, so padded x_dis regions are exactly zero before slicing.
    onem = _pad2((1.0 - jnp.asarray(mask, jnp.float32)).astype(jnp.int8),
                 n_pad, n_pad, jnp.int8)

    # ---- GCNConv 1: XW1 = X @ W1 ; H1 = relu(Â @ XW1 + b1) ----
    xw1 = _row_tiled_matmul(xp, w1p, tm, budget)
    h1 = _gcn_aggregate_relu(adjp, xw1, b1p, tm, tk, budget)
    # TODO(synk): training-mode dropout (RNG + 1/(1-p) scaling) not implemented;
    # eval-mode dropout is the identity, matching module.eval() semantics.

    # ---- GCNConv 2 + log_softmax + row-normalized z ----
    hw2 = _row_tiled_matmul(h1, w2p, tm, budget)
    logp_pad, zn = _gcn_aggregate_head(adjp, hw2, b2p, c, tm, tk, budget)

    # ---- get_feature_dis ----
    xdis_pad = _feature_dis(zn, onem, td, budget)

    return logp_pad[:n, :c], xdis_pad[:n, :n]


# --------------------------------------------------------------------------
# Plain-JAX glue + reference
# --------------------------------------------------------------------------

def build_normalized_adj(edge_index, num_nodes):
    """Dense D^{-1/2}(A+I)D^{-1/2} from a [2, E] edge_index (plain-JAX glue)."""
    src, dst = edge_index[0], edge_index[1]
    a = jnp.zeros((num_nodes, num_nodes), jnp.float32)
    a = a.at[src, dst].set(1.0)
    a = a.at[dst, src].set(1.0)                       # undirected
    eye = jnp.eye(num_nodes, dtype=jnp.float32)
    a = a * (1.0 - eye) + eye                         # single self-loop weight
    d_inv_sqrt = jax.lax.rsqrt(jnp.sum(a, axis=1))
    return a * d_inv_sqrt[:, None] * d_inv_sqrt[None, :]


def mirrored_reference(x, adj, w1, b1, w2, b2, mask):
    """Plain-JAX reference mirroring the kernel's bf16/f32 precision choices.
    (A pure-f32 reference matches the original module to bf16 precision.)"""
    bf16, f32 = jnp.bfloat16, jnp.float32
    xw1 = jnp.dot(x.astype(bf16), w1.astype(bf16),
                  preferred_element_type=f32).astype(bf16)
    h = jnp.maximum(jnp.dot(adj.astype(bf16), xw1,
                            preferred_element_type=f32) + b1, 0.0).astype(bf16)
    hw2 = jnp.dot(h, w2.astype(bf16), preferred_element_type=f32).astype(bf16)
    z = jnp.dot(adj.astype(bf16), hw2, preferred_element_type=f32) + b2
    m = jnp.max(z, axis=1, keepdims=True)
    lse = jnp.log(jnp.sum(jnp.exp(z - m), axis=1, keepdims=True)) + m
    logp = z - lse
    zn = (z * jax.lax.rsqrt(jnp.sum(z * z, axis=1, keepdims=True))).astype(bf16)
    x_dis = (1.0 - mask) * jnp.dot(zn, zn.T, preferred_element_type=f32)
    return logp, x_dis


# --------------------------------------------------------------------------
# Test
# --------------------------------------------------------------------------

if __name__ == "__main__":
    # Small graph consistent with the module: N nodes, F features, H hidden,
    # C classes.  N=200 pads to 256; tiles are auto-clamped to divide 256.
    N, F_IN, HID, C = 200, 48, 64, 7

    key = jax.random.PRNGKey(0)
    k_x, k_w1, k_b1, k_w2, k_b2, k_m, k_e = jax.random.split(key, 7)

    x = jax.random.normal(k_x, (N, F_IN), jnp.float32)

    # Ring graph + random chords as edge_index [2, E].
    src = jnp.arange(N, dtype=jnp.int32)
    dst = (src + 1) % N
    extra = jax.random.randint(k_e, (2, 4 * N), 0, N, dtype=jnp.int32)
    edge_index = jnp.concatenate([jnp.stack([src, dst], axis=0), extra], axis=1)
    adj = build_normalized_adj(edge_index, N)

    w1 = jax.random.normal(k_w1, (F_IN, HID), jnp.float32) / jnp.sqrt(float(F_IN))
    b1 = jax.random.normal(k_b1, (HID,), jnp.float32) * 0.01
    w2 = jax.random.normal(k_w2, (HID, C), jnp.float32) / jnp.sqrt(float(HID))
    b2 = jax.random.normal(k_b2, (C,), jnp.float32) * 0.01

    mask = (jax.random.uniform(k_m, (N, N)) > 0.5).astype(jnp.float32)

    logp, x_dis = gcn_loss_forward(x, adj, w1, b1, w2, b2, mask)
    jax.block_until_ready((logp, x_dis))

    ref_logp, ref_xdis = mirrored_reference(x, adj, w1, b1, w2, b2, mask)

    assert logp.shape == (N, C) and x_dis.shape == (N, N)
    assert jnp.allclose(logp, ref_logp, atol=5e-3, rtol=5e-3), \
        float(jnp.max(jnp.abs(logp - ref_logp)))
    assert jnp.allclose(x_dis, ref_xdis, atol=2e-2, rtol=2e-2), \
        float(jnp.max(jnp.abs(x_dis - ref_xdis)))

    print("KERNEL_OK")
</pallas_src>

<mosaic_0001>
module attributes {stable_mosaic.version = 11 : i64} {
  func.func @_rowtile_matmul_kernel(%arg0: i32, %arg1: memref<256x128xbf16, #tpu.memory_space<vmem>>, %arg2: memref<128x128xbf16, #tpu.memory_space<vmem>>, %arg3: memref<256x128xbf16, #tpu.memory_space<vmem>>) attributes {dimension_semantics = [#tpu.dimension_semantics<parallel>], iteration_bounds = array<i64: 1>, scalar_prefetch = 0 : i64, scratch_operands = 0 : i64, tpu.core_type = #tpu.core_type<tc>, window_params = [{transform_indices = @transform_0, window_bounds = array<i64: 256, 128>}, {pipeline_mode = #tpu.pipeline_mode<synchronous>, transform_indices = @transform_1, window_bounds = array<i64: 128, 128>}, {transform_indices = @transform_2, window_bounds = array<i64: 256, 128>}]} {
    %c0 = arith.constant 0 : index
    %c0_0 = arith.constant 0 : index
    %0 = vector.load %arg1[%c0, %c0_0] : memref<256x128xbf16, #tpu.memory_space<vmem>>, vector<256x128xbf16>
    %c0_1 = arith.constant 0 : index
    %c0_2 = arith.constant 0 : index
    %1 = vector.load %arg2[%c0_1, %c0_2] : memref<128x128xbf16, #tpu.memory_space<vmem>>, vector<128x128xbf16>
    %cst = arith.constant dense<0.000000e+00> : vector<256x128xf32>
    %2 = tpu.matmul %0, %1, %cst {dimension_numbers = #tpu.dot_dimension_numbers<[1], [0], [0], [1], [0, 0, 1, 1], [], []>} : vector<256x128xbf16>, vector<128x128xbf16>, vector<256x128xf32> -> vector<256x128xf32>
    %3 = arith.truncf %2 : vector<256x128xf32> to vector<256x128xbf16>
    %c0_3 = arith.constant 0 : index
    %c0_4 = arith.constant 0 : index
    %4 = vector.load %arg3[%c0_3, %c0_4] : memref<256x128xbf16, #tpu.memory_space<vmem>>, vector<256x128xbf16>
    tpu.vector_store %arg3[%c0_3, %c0_4], %3 {strides = array<i32>} : memref<256x128xbf16, #tpu.memory_space<vmem>>, vector<256x128xbf16>,
    return
  }
  func.func @transform_0(%arg0: i32) -> (i32, i32) {
    %c0_i32 = arith.constant 0 : i32
    %c0_i32_0 = arith.constant 0 : i32
    return %arg0, %c0_i32 : i32, i32
  }
  func.func @transform_1(%arg0: i32) -> (i32, i32) {
    %c0_i32 = arith.constant 0 : i32
    %c0_i32_0 = arith.constant 0 : i32
    %c0_i32_1 = arith.constant 0 : i32
    return %c0_i32, %c0_i32_0 : i32, i32
  }
  func.func @transform_2(%arg0: i32) -> (i32, i32) {
    %c0_i32 = arith.constant 0 : i32
    %c0_i32_0 = arith.constant 0 : i32
    return %arg0, %c0_i32 : i32, i32
  }
}

</mosaic_0001>

<bundles_post_ra>
// kernel: tpu_custom_call.1
= control target key start
LH: loop header
LB: loop body
LE: loop exit
PB: predicated region body
PF: predicated region fallthrough
CT: control target
= control target key end

     0   :  { %7 = vsyncpa [#allocation3], 0  ;;  %s769_s0 = inlined_call_operand.hbm [shape: bf16[256,128], index: 0, kind: input, shape index: {}]   ;;  %s770_s1 = inlined_call_operand.hbm [shape: bf16[128,128], index: 1, kind: input, shape index: {}]   ;;  %s771_s2 = inlined_call_operand.hbm [shape: bf16[256,128], index: 2, kind: output, shape index: {}]  }
   0x1   :  { %8 = vsyncpa [#allocation6], 0 }
   0x2   :  { %9 = vsyncpa [#allocation4], 0  ;;  %s14_s11 = sshll.u32 %s769_s0, 4  ;;  %s731_s12 = smov [#allocation2]   ;;  %s15_s11 = int_to_ptr.hbm [resolvable:$true] %s14_s11 }
   0x3   :  { %s16_s13 = sshll.u32 %s731_s12, 4  ;;  %s27_s16 = sshll.u32 %s770_s1, 4  ;;  %s17_s13 = int_to_ptr.vmem [resolvable:$true] %s16_s13  ;;  %s28_s16 = int_to_ptr.hbm [resolvable:$true] %s27_s16 }
   0x4   :  { %s732_s17 = smov 64   ;;  %s733_s18 = smov 4  }
   0x5   :  { %22 = dma.hbm_to_vmem [thread:$0]  %s15_s11, 2048, %s17_s13, [#allocation3], %s732_s17, %s732_s17, %s733_s18  }
   0x6   :  { %s734_s19 = smov [#allocation5]  }
   0x7   :  { %s29_s20 = sshll.u32 %s734_s19, 4  ;;  %s30_s20 = int_to_ptr.vmem [resolvable:$true] %s29_s20 }
   0x8   :  { %35 = dma.hbm_to_vmem [thread:$0]  %s28_s16, 1024, %s30_s20, [#allocation6], %s732_s17, %s732_s17, %s733_s18  }
   0x9   :  { %725 = dma.done.wait [#allocation3], 2048  }
   0xa   :  { %726 = vsyncadd [#allocation3], 4294965248 }
   0xb   :  { %727 = dma.done.wait [#allocation6], 1024  }
   0xc   :  { %728 = vsyncadd [#allocation6], 4294966272  ;;  %v528_v0 = vld [vmem:[#allocation5 + $0x38] sm:$0xff]  ;;  %v527_v1 = vld [vmem:[#allocation5 + $0x30] sm:$0xff]  ;;  %s735_s0 = smov [#allocation7]   ;;  %s395_s23 = sshll.u32 %s771_s2, 4  ;;  %s396_s23 = int_to_ptr.hbm [resolvable:$true] %s395_s23 }
   0xd   :  { %236 = vmatpush.bf16.msra.mxu0 %v528_v0  ;;  %624 = vmatpush.bf16.msra.mxu1 %v528_v0  ;;  %v526_v2 = vld [vmem:[#allocation5 + $0x28] sm:$0xff]  ;;  %v525_v3 = vld [vmem:[#allocation5 + $0x20] sm:$0xff]  ;;  %v524_v4 = vld [vmem:[#allocation5 + $0x18] sm:$0xff]  ;;  %s393_s1 = sshll.u32 %s735_s0, 4  ;;  %s394_s1 = int_to_ptr.vmem [resolvable:$true] %s393_s1 }
   0xe   :  { %625 = vmatpush.bf16.msra.mxu2 %v528_v0  ;;  %626 = vmatpush.bf16.msra.mxu3 %v528_v0  ;;  %v523_v5 = vld [vmem:[#allocation5 + $0x10] sm:$0xff]  ;;  %v522_v6 = vld [vmem:[#allocation5 + $0x8] sm:$0xff]  ;;  %v521_v7 = vld [vmem:[#allocation5] sm:$0xff] }
   0xf   :  { %v505_v8 = vld [vmem:[#allocation2] sm:$0xff]  ;;  %v506_v12 = vld [vmem:[#allocation2 + $0x8] sm:$0xff]  ;;  %v507_v16 = vld [vmem:[#allocation2 + $0x10] sm:$0xff] }
  0x10   :  { %v509_v9 = vld [vmem:[#allocation2 + $0x20] sm:$0xff]  ;;  %v510_v13 = vld [vmem:[#allocation2 + $0x28] sm:$0xff]  ;;  %v511_v17 = vld [vmem:[#allocation2 + $0x30] sm:$0xff] }
  0x11   :  { %237 = vmatpush.bf16.msra.mxu0 %v527_v1  ;;  %627 = vmatpush.bf16.msra.mxu1 %v527_v1  ;;  %v513_v10 = vld [vmem:[#allocation2 + $0x40] sm:$0xff]  ;;  %v514_v14 = vld [vmem:[#allocation2 + $0x48] sm:$0xff]  ;;  %v515_v18 = vld [vmem:[#allocation2 + $0x50] sm:$0xff] }
  0x12   :  { %628 = vmatpush.bf16.msra.mxu2 %v527_v1  ;;  %629 = vmatpush.bf16.msra.mxu3 %v527_v1  ;;  %v517_v11 = vld [vmem:[#allocation2 + $0x60] sm:$0xff]  ;;  %v518_v15 = vld [vmem:[#allocation2 + $0x68] sm:$0xff]  ;;  %v519_v19 = vld [vmem:[#allocation2 + $0x70] sm:$0xff] }
  0x13   :  { %v508_v20 = vld [vmem:[#allocation2 + $0x18] sm:$0xff] }
  0x14   :  { %v512_v21 = vld [vmem:[#allocation2 + $0x38] sm:$0xff] }
  0x15   :  { %238 = vmatpush.bf16.msra.mxu0 %v526_v2  ;;  %630 = vmatpush.bf16.msra.mxu1 %v526_v2  ;;  %v516_v22 = vld [vmem:[#allocation2 + $0x58] sm:$0xff] }
  0x16   :  { %631 = vmatpush.bf16.msra.mxu2 %v526_v2  ;;  %632 = vmatpush.bf16.msra.mxu3 %v526_v2  ;;  %v520_v23 = vld [vmem:[#allocation2 + $0x78] sm:$0xff] }
  0x19   :  { %239 = vmatpush.bf16.msra.mxu0 %v525_v3  ;;  %633 = vmatpush.bf16.msra.mxu1 %v525_v3 }
  0x1a   :  { %634 = vmatpush.bf16.msra.mxu2 %v525_v3  ;;  %635 = vmatpush.bf16.msra.mxu3 %v525_v3 }
  0x1d   :  { %240 = vmatpush.bf16.msra.mxu0 %v524_v4  ;;  %636 = vmatpush.bf16.msra.mxu1 %v524_v4 }
  0x1e   :  { %637 = vmatpush.bf16.msra.mxu2 %v524_v4  ;;  %638 = vmatpush.bf16.msra.mxu3 %v524_v4 }
  0x21   :  { %241 = vmatpush.bf16.msra.mxu0 %v523_v5  ;;  %639 = vmatpush.bf16.msra.mxu1 %v523_v5 }
  0x22   :  { %640 = vmatpush.bf16.msra.mxu2 %v523_v5  ;;  %641 = vmatpush.bf16.msra.mxu3 %v523_v5 }
  0x25   :  { %242 = vmatpush.bf16.msra.mxu0 %v522_v6  ;;  %642 = vmatpush.bf16.msra.mxu1 %v522_v6 }
  0x26   :  { %643 = vmatpush.bf16.msra.mxu2 %v522_v6  ;;  %644 = vmatpush.bf16.msra.mxu3 %v522_v6 }
  0x29   :  { %243 = vmatpush.bf16.msra.mxu0 %v521_v7  ;;  %645 = vmatpush.bf16.msra.mxu1 %v521_v7 }
  0x2a   :  { %646 = vmatpush.bf16.msra.mxu2 %v521_v7  ;;  %647 = vmatpush.bf16.msra.mxu3 %v521_v7 }
  0x2c   :  { %244 = vmatmul.bf16.vlgmr.msra.gmra.mxu0 %v505_v8  ;;  %264 = vmatmul.bf16.vlgmr.msra.gmra.mxu1 %v509_v9 }
  0x2d   :  { %284 = vmatmul.bf16.vlgmr.msra.gmra.mxu2 %v513_v10  ;;  %304 = vmatmul.bf16.vlgmr.msra.gmra.mxu3 %v517_v11 }
  0x3c   :  { %249 = vmatmul.bf16.gmra.mxu0 %v506_v12  ;;  %269 = vmatmul.bf16.gmra.mxu1 %v510_v13 }
  0x3d   :  { %289 = vmatmul.bf16.gmra.mxu2 %v514_v14  ;;  %309 = vmatmul.bf16.gmra.mxu3 %v518_v15 }
  0x4c   :  { %254 = vmatmul.bf16.gmra.mxu0 %v507_v16  ;;  %274 = vmatmul.bf16.gmra.mxu1 %v511_v17 }
  0x4d   :  { %294 = vmatmul.bf16.gmra.mxu2 %v515_v18  ;;  %314 = vmatmul.bf16.gmra.mxu3 %v519_v19 }
  0x5c   :  { %259 = vmatmul.bf16.gmra.mxu0 %v508_v20  ;;  %279 = vmatmul.bf16.gmra.mxu1 %v512_v21 }
  0x5d   :  { %299 = vmatmul.bf16.gmra.mxu2 %v516_v22  ;;  %319 = vmatmul.bf16.gmra.mxu3 %v520_v23 }
  0xa9   :  { %v245_v24 = vpop.f32.mrf.mxu0  ;;  %v265_v25 = vpop.f32.mrf.mxu1 }
  0xb0   :  { %v285_v26 = vpop.f32.mrf.mxu2  ;;  %v305_v27 = vpop.f32.mrf.mxu3 }
  0xb1   :  { %v247_v28 = vpop.f32.mrf.mxu0  ;;  %v267_v29 = vpop.f32.mrf.mxu1 }
  0xb2   :  { %v532_v30 = vpack.c.bf16 %v247_v28, %v245_v24  ;;  %v552_v31 = vpack.c.bf16 %v267_v29, %v265_v25 }
  0xb4   :  { %533 = vst [vmem:[#allocation7] sm:$0xff] %v532_v30  }
  0xb5   :  { %612 = vst [vmem:[#allocation7 + $0x20] sm:$0xff] %v552_v31  }
  0xb8   :  { %v287_v32 = vpop.f32.mrf.mxu2  ;;  %v307_v33 = vpop.f32.mrf.mxu3 }
  0xb9   :  { %v572_v34 = vpack.c.bf16 %v287_v32, %v285_v26  ;;  %v592_v35 = vpack.c.bf16 %v307_v33, %v305_v27  ;;  %v250_v36 = vpop.f32.mrf.mxu0  ;;  %v270_v37 = vpop.f32.mrf.mxu1 }
  0xbb   :  { %616 = vst [vmem:[#allocation7 + $0x40] sm:$0xff] %v572_v34  }
  0xbc   :  { %620 = vst [vmem:[#allocation7 + $0x60] sm:$0xff] %v592_v35  }
  0xc0   :  { %v290_v38 = vpop.f32.mrf.mxu2  ;;  %v310_v39 = vpop.f32.mrf.mxu3 }
  0xc1   :  { %v252_v40 = vpop.f32.mrf.mxu0  ;;  %v272_v41 = vpop.f32.mrf.mxu1 }
  0xc2   :  { %v537_v42 = vpack.c.bf16 %v252_v40, %v250_v36  ;;  %v557_v43 = vpack.c.bf16 %v272_v41, %v270_v37 }
  0xc4   :  { %609 = vst [vmem:[#allocation7 + $0x8] sm:$0xff] %v537_v42  }
  0xc5   :  { %613 = vst [vmem:[#allocation7 + $0x28] sm:$0xff] %v557_v43  }
  0xc8   :  { %v292_v44 = vpop.f32.mrf.mxu2  ;;  %v312_v45 = vpop.f32.mrf.mxu3 }
  0xc9   :  { %v577_v46 = vpack.c.bf16 %v292_v44, %v290_v38  ;;  %v597_v47 = vpack.c.bf16 %v312_v45, %v310_v39  ;;  %v255_v48 = vpop.f32.mrf.mxu0  ;;  %v275_v49 = vpop.f32.mrf.mxu1 }
  0xcb   :  { %617 = vst [vmem:[#allocation7 + $0x48] sm:$0xff] %v577_v46  }
  0xcc   :  { %621 = vst [vmem:[#allocation7 + $0x68] sm:$0xff] %v597_v47  }
  0xd0   :  { %v295_v50 = vpop.f32.mrf.mxu2  ;;  %v315_v51 = vpop.f32.mrf.mxu3 }
  0xd1   :  { %v257_v52 = vpop.f32.mrf.mxu0  ;;  %v277_v53 = vpop.f32.mrf.mxu1 }
  0xd2   :  { %v542_v54 = vpack.c.bf16 %v257_v52, %v255_v48  ;;  %v562_v55 = vpack.c.bf16 %v277_v53, %v275_v49 }
  0xd4   :  { %610 = vst [vmem:[#allocation7 + $0x10] sm:$0xff] %v542_v54  }
  0xd5   :  { %614 = vst [vmem:[#allocation7 + $0x30] sm:$0xff] %v562_v55  }
  0xd8   :  { %v297_v56 = vpop.f32.mrf.mxu2  ;;  %v317_v57 = vpop.f32.mrf.mxu3 }
  0xd9   :  { %v582_v58 = vpack.c.bf16 %v297_v56, %v295_v50  ;;  %v602_v59 = vpack.c.bf16 %v317_v57, %v315_v51  ;;  %v260_v60 = vpop.f32.mrf.mxu0  ;;  %v280_v61 = vpop.f32.mrf.mxu1 }
  0xdb   :  { %618 = vst [vmem:[#allocation7 + $0x50] sm:$0xff] %v582_v58  }
  0xdc   :  { %622 = vst [vmem:[#allocation7 + $0x70] sm:$0xff] %v602_v59  }
  0xe0   :  { %v300_v62 = vpop.f32.mrf.mxu2  ;;  %v320_v63 = vpop.f32.mrf.mxu3 }
  0xe1   :  { %v262_v0 = vpop.f32.mrf.mxu0  ;;  %v282_v1 = vpop.f32.mrf.mxu1 }
  0xe2   :  { %v547_v2 = vpack.c.bf16 %v262_v0, %v260_v60  ;;  %v567_v3 = vpack.c.bf16 %v282_v1, %v280_v61 }
  0xe4   :  { %611 = vst [vmem:[#allocation7 + $0x18] sm:$0xff] %v547_v2  }
  0xe5   :  { %615 = vst [vmem:[#allocation7 + $0x38] sm:$0xff] %v567_v3  }
  0xe8   :  { %v302_v4 = vpop.f32.mrf.mxu2  ;;  %v322_v5 = vpop.f32.mrf.mxu3 }
  0xe9   :  { %v587_v6 = vpack.c.bf16 %v302_v4, %v300_v62  ;;  %v607_v7 = vpack.c.bf16 %v322_v5, %v320_v63 }
  0xeb   :  { %619 = vst [vmem:[#allocation7 + $0x58] sm:$0xff] %v587_v6  }
  0xec   :  { %623 = vst [vmem:[#allocation7 + $0x78] sm:$0xff] %v607_v7  }
  0xed   :  { %401 = dma.vmem_to_hbm [thread:$0]  %s394_s1, 2048, %s396_s23, [#allocation4], %s732_s17, %s732_s17, %s733_s18  }
  0xee   :  { %729 = dma.done.wait [#allocation4], 2048  }
  0xef   :  { %730 = vsyncadd [#allocation4], 4294965248 }
  0xf0   :  { %406 = vsyncpa [#allocation3], 1 }
  0xf1   :  { %407 = vsyncpa [#allocation6], 1 }
  0xf2   :  { %408 = vsyncpa [#allocation4], 1 }

</bundles_post_ra>
